<compile_context>
chip_gen: v5e
topology: v5e:2x2
jax: 0.10.0
libtpu: 0.0.40
codegen_flags: <defaults>
</compile_context>

<pallas_src>
import functools

import jax
import jax.numpy as jnp
from jax.experimental import pallas as pl
from jax.experimental.pallas import tpu as pltpu

_MIB = 1024 * 1024


def _span_pair_fused_kernel(x1_ref, x2_ref, w1_ref, b1_ref,
                            w2p_ref, w2c_ref, b2_ref, o_ref, a_ref, *, chunk):
    # Block shapes:
    #   x1_ref : (1, TN1, Din)     x2_ref : (1, TN2, Din)
    #   w1_ref : (Din, Dr)         b1_ref : (1, Dr)
    #   w2p_ref: (Dr, Drepr)       w2c_ref: (Dr, Drepr)    b2_ref: (1, Drepr)
    #   o_ref  : (1, TN1, TN2, Drepr)
    #   a_ref  : VMEM scratch (TN1, Drepr) f32, cached across the N2-tile axis
    j = pl.program_id(2)

    # span1 side (layer-1 + its half of layer-2) is invariant along the
    # innermost N2-tile axis: compute once per (batch, N1-tile) sweep and cache
    # in scratch.  The N2-tile grid axis is "arbitrary" so megacore sharding
    # cannot split a sweep across TensorCores.
    @pl.when(j == 0)
    def _():
        s1 = jnp.maximum(
            jnp.dot(x1_ref[0], w1_ref[...],
                    preferred_element_type=jnp.float32) + b1_ref[...], 0.0)
        a_ref[...] = jnp.dot(s1, w2p_ref[...],
                             preferred_element_type=jnp.float32)

    # span2 side: its tile changes every grid step, so recompute.  b2 is folded
    # in here (once per span2 row) instead of once per output element.
    s2 = jnp.maximum(
        jnp.dot(x2_ref[0], w1_ref[...],
                preferred_element_type=jnp.float32) + b1_ref[...], 0.0)
    c = jnp.dot(s2, w2c_ref[...],
                preferred_element_type=jnp.float32) + b2_ref[...]   # (TN2, Drepr)

    # Epilogue: out[i, j, :] = ReLU(a[i] + c[j]).  Chunk over the span1-row
    # axis so only a (chunk, TN2, Drepr) temporary is live at a time, keeping
    # the store pipeline streaming instead of materializing the whole
    # (TN1, TN2, Drepr) f32 block in VMEM.
    tn1 = a_ref.shape[0]

    def body(k, carry):
        off = pl.multiple_of(k * chunk, chunk)
        a_k = a_ref[pl.ds(off, chunk), :]                 # (chunk, Drepr)
        blk = a_k[:, None, :] + c[None, :, :]             # (chunk, TN2, Drepr)
        o_ref[0, pl.ds(off, chunk), :, :] = jnp.maximum(blk, 0.0).astype(o_ref.dtype)
        return carry

    jax.lax.fori_loop(0, tn1 // chunk, body, 0)


def _vmem_capacity_bytes():
    """Per-TensorCore VMEM capacity; fall back to the smallest current gen."""
    try:
        info = pltpu.get_tpu_info()
        cap = int(getattr(info, "vmem_capacity_bytes", 0))
        if cap > 0:
            return cap
    except Exception:
        pass
    return 64 * _MIB   # v7x-safe conservative default


def _pick_tiles(B, N1, N2, Din, Drepr, in_ib, out_ib, param_bytes):
    """Choose (tn1, tn2, chunk, vmem_limit_bytes) from the VMEM budget.

    The budget is driven by the OUTPUT block: the (1, tn1, tn2, Drepr) tile is
    double-buffered by the pipeline, so resident VMEM scales with
    2*tn1*tn2*Drepr*out_itemsize — tn2 (N2) matters, not just N1.
    """
    cap = _vmem_capacity_bytes()
    # Keep total resident buffers comfortably inside one TensorCore's VMEM:
    # <= 48 MiB with >= 16 MiB headroom (v7x has only 64 MiB per TC).
    budget = max(min(cap - 16 * _MIB, 48 * _MIB), 24 * _MIB)

    # Span2 (column) tile: full N2 when small, else a sublane-friendly 256.
    tn2 = N2 if N2 <= 256 else 256
    # Guard pathological very-wide Drepr: shrink tn2 until 8 output rows fit.
    while tn2 > 8 and 2 * 8 * tn2 * Drepr * out_ib > budget // 2:
        tn2 = max(8, ((tn2 // 2) // 8) * 8)

    fixed = 2 * param_bytes                                   # weights (2x: dbl-buffer)
    x2_cost = 2 * tn2 * Din * in_ib + tn2 * Drepr * 4         # x2 block + c temp
    slack = 4 * _MIB
    per_row = (2 * tn2 * Drepr * out_ib                       # output block (x2 buffers)
               + 2 * Din * in_ib                              # x1 block (x2 buffers)
               + Drepr * 4)                                   # a_ref scratch
    avail = max(budget - fixed - x2_cost - slack, per_row * 8)
    tn1 = min(N1, max(8, avail // per_row), 512)
    if tn1 < N1 and tn1 % 8 != 0:
        tn1 = max(8, (tn1 // 8) * 8)

    # Ensure a *parallel* grid axis has >= 2 steps so both v7x TensorCores get
    # work (a single extra step is harmless on 1-TC chips).
    if B * pl.cdiv(N1, tn1) < 2 and N1 >= 16:
        tn1 = max(8, (((N1 + 1) // 2) + 7) // 8 * 8)

    # Epilogue chunk along the span1-row axis; keep its temporary <= ~2 MiB.
    max_chunk = max(8, (2 * _MIB) // (tn2 * Drepr * 4))
    chunk = tn1
    for cand in (64, 32, 16, 8):
        if cand <= max_chunk and tn1 % cand == 0:
            chunk = cand
            break

    resident = (2 * tn1 * tn2 * Drepr * out_ib
                + 2 * tn1 * Din * in_ib
                + 2 * tn2 * Din * in_ib
                + tn1 * Drepr * 4                 # a_ref scratch
                + tn2 * Drepr * 4                 # c temporary
                + chunk * tn2 * Drepr * 4         # epilogue chunk temporary
                + fixed)
    vmem_limit = int(min(cap, max(32 * _MIB, resident + resident // 2 + 8 * _MIB)))
    return int(tn1), int(tn2), int(chunk), vmem_limit


def span_pair_layer(span1, span2, params, *, out_dtype=None):
    """Fused SpanPairLayer forward (repr_layer path, separate=False, ReLU FFs).

    span1: (B, N1, Din), span2: (B, N2, Din)  ->  (B, N1*N2, Drepr)

    out_dtype: output storage dtype.  Compute/accumulation is always f32; pass
    jnp.bfloat16 to halve HBM writeback (this kernel is output-write bound).
    """
    w1, b1, w2, b2 = params["w1"], params["b1"], params["w2"], params["b2"]
    B, N1, Din = span1.shape
    _, N2, _ = span2.shape
    Dr = w1.shape[1]
    Drepr = w2.shape[1]
    out_dtype = span1.dtype if out_dtype is None else jnp.dtype(out_dtype)

    # Split W2 once host-side: concat([s1_i, s2_j]) @ W2 == s1_i@W2[:Dr] + s2_j@W2[Dr:]
    w2p, w2c = w2[:Dr], w2[Dr:]
    b1r = b1.reshape(1, Dr)
    b2r = b2.reshape(1, Drepr)

    in_ib = jnp.dtype(span1.dtype).itemsize
    out_ib = jnp.dtype(out_dtype).itemsize
    par_ib = jnp.dtype(w1.dtype).itemsize
    param_bytes = (w1.size + b1.size + w2.size + b2.size) * par_ib

    tn1, tn2, chunk, vmem_limit = _pick_tiles(
        B, N1, N2, Din, Drepr, in_ib, out_ib, param_bytes)

    grid = (B, pl.cdiv(N1, tn1), pl.cdiv(N2, tn2))
    n1_steps = grid[1]

    flops = int(2 * B * N1 * Din * Dr                    # layer-1, span1 (cached)
                + 2 * B * n1_steps * N2 * Din * Dr       # layer-1, span2 (per row tile)
                + 2 * B * N1 * Dr * Drepr                # layer-2 half A
                + 2 * B * n1_steps * N2 * Dr * Drepr     # layer-2 half C
                + 2 * B * N1 * N2 * Drepr)               # broadcast add + ReLU
    bytes_accessed = int(span1.size * in_ib
                         + n1_steps * span2.size * in_ib
                         + param_bytes
                         + B * N1 * N2 * Drepr * out_ib)

    kernel = functools.partial(_span_pair_fused_kernel, chunk=chunk)

    out4 = pl.pallas_call(
        kernel,
        out_shape=jax.ShapeDtypeStruct((B, N1, N2, Drepr), out_dtype),
        grid=grid,
        in_specs=[
            pl.BlockSpec((1, tn1, Din), lambda b, i, j: (b, i, 0)),   # span1 row tile
            pl.BlockSpec((1, tn2, Din), lambda b, i, j: (b, j, 0)),   # span2 col tile
            pl.BlockSpec((Din, Dr),     lambda b, i, j: (0, 0)),      # W1 (shared)
            pl.BlockSpec((1, Dr),       lambda b, i, j: (0, 0)),      # b1
            pl.BlockSpec((Dr, Drepr),   lambda b, i, j: (0, 0)),      # W2[:Dr]
            pl.BlockSpec((Dr, Drepr),   lambda b, i, j: (0, 0)),      # W2[Dr:]
            pl.BlockSpec((1, Drepr),    lambda b, i, j: (0, 0)),      # b2
        ],
        out_specs=pl.BlockSpec((1, tn1, tn2, Drepr),
                               lambda b, i, j: (b, i, j, 0)),
        scratch_shapes=[pltpu.VMEM((tn1, Drepr), jnp.float32)],
        compiler_params=pltpu.CompilerParams(
            # Batch and N1-tile axes are independent (megacore-shardable); the
            # N2-tile axis must stay sequential because span1-side results are
            # cached in scratch across it.
            dimension_semantics=("parallel", "parallel", "arbitrary"),
            vmem_limit_bytes=vmem_limit),
        cost_estimate=pl.CostEstimate(
            flops=flops, transcendentals=0, bytes_accessed=bytes_accessed),
    )(span1, span2, w1, b1r, w2p, w2c, b2r)

    # (B, N1, N2, Drepr) -> (B, N1*N2, Drepr): leading-dim collapse, a free
    # metadata reshape in XLA (no HBM round trip).
    return out4.reshape(B, N1 * N2, Drepr)
    # TODO(synk): separate=True (deep-copied dim-reduce layer) and the
    # repr_layer=None branch (returns (span1, span2) un-paired) are not
    # exercised here; only the default separate=False + repr_layer path is.


def _reference(span1, span2, params):
    """Pure-JAX mirror of the PyTorch module's forward."""
    w1, b1, w2, b2 = params["w1"], params["b1"], params["w2"], params["b2"]
    s1 = jnp.maximum(jnp.einsum("bnd,de->bne", span1, w1) + b1, 0.0)
    s2 = jnp.maximum(jnp.einsum("bnd,de->bne", span2, w1) + b1, 0.0)
    B, N1, Dr = s1.shape
    N2 = s2.shape[1]
    pair = jnp.concatenate(
        [jnp.repeat(s1[:, :, None, :], N2, axis=2),
         jnp.repeat(s2[:, None, :, :], N1, axis=1)], axis=-1)
    pair = pair.reshape(B, N1 * N2, 2 * Dr)
    return jnp.maximum(jnp.einsum("bpd,de->bpe", pair, w2) + b2, 0.0)


if __name__ == "__main__":
    # Small shapes consistent with the module's forward.
    B = 2            # batch
    N1 = 16          # num spans (input 1)
    N2 = 16          # num spans (input 2)
    D_IN = 32        # span embedding dim (dim_reduce input)
    D_RED = 64       # dim_reduce output dim
    D_REPR = 128     # repr_layer output dim (lane-dense)

    key = jax.random.PRNGKey(0)
    k1, k2, kw1, kb1, kw2, kb2 = jax.random.split(key, 6)

    span1 = jax.random.normal(k1, (B, N1, D_IN), jnp.float32)
    span2 = jax.random.normal(k2, (B, N2, D_IN), jnp.float32)

    params = {
        "w1": 0.1 * jax.random.normal(kw1, (D_IN, D_RED), jnp.float32),
        "b1": 0.1 * jax.random.normal(kb1, (D_RED,), jnp.float32),
        "w2": 0.1 * jax.random.normal(kw2, (2 * D_RED, D_REPR), jnp.float32),
        "b2": 0.1 * jax.random.normal(kb2, (D_REPR,), jnp.float32),
    }

    ref = _reference(span1, span2, params)

    # f32 output (default): matches the f32 reference tightly.
    out = jax.block_until_ready(span_pair_layer(span1, span2, params))
    assert out.shape == (B, N1 * N2, D_REPR), out.shape
    assert jnp.allclose(out, ref, atol=1e-5, rtol=1e-5), \
        float(jnp.max(jnp.abs(out - ref)))

    # bf16-output path (halves HBM writeback on the write-bound kernel);
    # compute stays f32, only the store is cast.
    out_bf16 = jax.block_until_ready(
        span_pair_layer(span1, span2, params, out_dtype=jnp.bfloat16))
    assert out_bf16.dtype == jnp.bfloat16
    assert jnp.allclose(out_bf16.astype(jnp.float32), ref, atol=5e-2, rtol=5e-2), \
        float(jnp.max(jnp.abs(out_bf16.astype(jnp.float32) - ref)))

    print("KERNEL_OK")
</pallas_src>

<mosaic_0001>
module attributes {stable_mosaic.version = 11 : i64} {
  func.func @_span_pair_fused_kernel(%arg0: i32, %arg1: i32, %arg2: i32, %arg3: memref<1x16x32xf32, #tpu.memory_space<vmem>>, %arg4: memref<1x16x32xf32, #tpu.memory_space<vmem>>, %arg5: memref<32x64xf32, #tpu.memory_space<vmem>>, %arg6: memref<1x64xf32, #tpu.memory_space<vmem>>, %arg7: memref<64x128xf32, #tpu.memory_space<vmem>>, %arg8: memref<64x128xf32, #tpu.memory_space<vmem>>, %arg9: memref<1x128xf32, #tpu.memory_space<vmem>>, %arg10: memref<1x16x16x128xf32, #tpu.memory_space<vmem>>, %arg11: memref<16x128xf32, #tpu.memory_space<vmem>>) attributes {dimension_semantics = [#tpu.dimension_semantics<parallel>, #tpu.dimension_semantics<parallel>, #tpu.dimension_semantics<arbitrary>], iteration_bounds = array<i64: 2, 1, 1>, scalar_prefetch = 0 : i64, scratch_operands = 1 : i64, tpu.core_type = #tpu.core_type<tc>, window_params = [{transform_indices = @transform_0, window_bounds = array<i64: 1, 16, 32>}, {transform_indices = @transform_1, window_bounds = array<i64: 1, 16, 32>}, {pipeline_mode = #tpu.pipeline_mode<synchronous>, transform_indices = @transform_2, window_bounds = array<i64: 32, 64>}, {pipeline_mode = #tpu.pipeline_mode<synchronous>, transform_indices = @transform_3, window_bounds = array<i64: 1, 64>}, {pipeline_mode = #tpu.pipeline_mode<synchronous>, transform_indices = @transform_4, window_bounds = array<i64: 64, 128>}, {pipeline_mode = #tpu.pipeline_mode<synchronous>, transform_indices = @transform_5, window_bounds = array<i64: 64, 128>}, {pipeline_mode = #tpu.pipeline_mode<synchronous>, transform_indices = @transform_6, window_bounds = array<i64: 1, 128>}, {transform_indices = @transform_7, window_bounds = array<i64: 1, 16, 16, 128>}]} {
    %c0_i32 = arith.constant 0 : i32
    %0 = arith.cmpi eq, %arg2, %c0_i32 : i32
    %1 = arith.extui %0 : i1 to i32
    %c0_i32_0 = arith.constant 0 : i32
    %2 = arith.cmpi ne, %1, %c0_i32_0 : i32
    scf.if %2 {
      %c0_19 = arith.constant 0 : index
      %c0_20 = arith.constant 0 : index
      %c0_21 = arith.constant 0 : index
      %32 = vector.load %arg3[%c0_19, %c0_20, %c0_21] : memref<1x16x32xf32, #tpu.memory_space<vmem>>, vector<1x16x32xf32>
      %33 = vector.shape_cast %32 : vector<1x16x32xf32> to vector<16x32xf32>
      %c0_22 = arith.constant 0 : index
      %c0_23 = arith.constant 0 : index
      %34 = vector.load %arg5[%c0_22, %c0_23] : memref<32x64xf32, #tpu.memory_space<vmem>>, vector<32x64xf32>
      %cst_24 = arith.constant dense<0.000000e+00> : vector<16x64xf32>
      %35 = tpu.matmul %33, %34, %cst_24 {dimension_numbers = #tpu.dot_dimension_numbers<[1], [0], [0], [1], [0, 0, 1, 1], [], []>} : vector<16x32xf32>, vector<32x64xf32>, vector<16x64xf32> -> vector<16x64xf32>
      %c0_25 = arith.constant 0 : index
      %c0_26 = arith.constant 0 : index
      %36 = vector.load %arg6[%c0_25, %c0_26] : memref<1x64xf32, #tpu.memory_space<vmem>>, vector<1x64xf32>
      %37 = vector.broadcast %36 : vector<1x64xf32> to vector<16x64xf32>
      %38 = arith.addf %35, %37 : vector<16x64xf32>
      %cst_27 = arith.constant 0.000000e+00 : f32
      %39 = vector.broadcast %cst_27 : f32 to vector<16x64xf32>
      %40 = arith.maximumf %38, %39 : vector<16x64xf32>
      %c0_28 = arith.constant 0 : index
      %c0_29 = arith.constant 0 : index
      %41 = vector.load %arg7[%c0_28, %c0_29] : memref<64x128xf32, #tpu.memory_space<vmem>>, vector<64x128xf32>
      %cst_30 = arith.constant dense<0.000000e+00> : vector<16x128xf32>
      %42 = tpu.matmul %40, %41, %cst_30 {dimension_numbers = #tpu.dot_dimension_numbers<[1], [0], [0], [1], [0, 0, 1, 1], [], []>} : vector<16x64xf32>, vector<64x128xf32>, vector<16x128xf32> -> vector<16x128xf32>
      %c0_31 = arith.constant 0 : index
      %c0_32 = arith.constant 0 : index
      %43 = vector.load %arg11[%c0_31, %c0_32] : memref<16x128xf32, #tpu.memory_space<vmem>>, vector<16x128xf32>
      tpu.vector_store %arg11[%c0_31, %c0_32], %42 {strides = array<i32>} : memref<16x128xf32, #tpu.memory_space<vmem>>, vector<16x128xf32>,
    } else {
    }
    %c0 = arith.constant 0 : index
    %c0_1 = arith.constant 0 : index
    %c0_2 = arith.constant 0 : index
    %3 = vector.load %arg4[%c0, %c0_1, %c0_2] : memref<1x16x32xf32, #tpu.memory_space<vmem>>, vector<1x16x32xf32>
    %4 = vector.shape_cast %3 : vector<1x16x32xf32> to vector<16x32xf32>
    %c0_3 = arith.constant 0 : index
    %c0_4 = arith.constant 0 : index
    %5 = vector.load %arg5[%c0_3, %c0_4] : memref<32x64xf32, #tpu.memory_space<vmem>>, vector<32x64xf32>
    %cst = arith.constant dense<0.000000e+00> : vector<16x64xf32>
    %6 = tpu.matmul %4, %5, %cst {dimension_numbers = #tpu.dot_dimension_numbers<[1], [0], [0], [1], [0, 0, 1, 1], [], []>} : vector<16x32xf32>, vector<32x64xf32>, vector<16x64xf32> -> vector<16x64xf32>
    %c0_5 = arith.constant 0 : index
    %c0_6 = arith.constant 0 : index
    %7 = vector.load %arg6[%c0_5, %c0_6] : memref<1x64xf32, #tpu.memory_space<vmem>>, vector<1x64xf32>
    %8 = vector.broadcast %7 : vector<1x64xf32> to vector<16x64xf32>
    %9 = arith.addf %6, %8 : vector<16x64xf32>
    %cst_7 = arith.constant 0.000000e+00 : f32
    %10 = vector.broadcast %cst_7 : f32 to vector<16x64xf32>
    %11 = arith.maximumf %9, %10 : vector<16x64xf32>
    %c0_8 = arith.constant 0 : index
    %c0_9 = arith.constant 0 : index
    %12 = vector.load %arg8[%c0_8, %c0_9] : memref<64x128xf32, #tpu.memory_space<vmem>>, vector<64x128xf32>
    %cst_10 = arith.constant dense<0.000000e+00> : vector<16x128xf32>
    %13 = tpu.matmul %11, %12, %cst_10 {dimension_numbers = #tpu.dot_dimension_numbers<[1], [0], [0], [1], [0, 0, 1, 1], [], []>} : vector<16x64xf32>, vector<64x128xf32>, vector<16x128xf32> -> vector<16x128xf32>
    %c0_11 = arith.constant 0 : index
    %c0_12 = arith.constant 0 : index
    %14 = vector.load %arg9[%c0_11, %c0_12] : memref<1x128xf32, #tpu.memory_space<vmem>>, vector<1x128xf32>
    %15 = vector.broadcast %14 : vector<1x128xf32> to vector<16x128xf32>
    %16 = arith.addf %13, %15 : vector<16x128xf32>
    %c0_i32_13 = arith.constant 0 : i32
    %c16_i32 = arith.constant 16 : i32
    %17 = arith.muli %c0_i32_13, %c16_i32 : i32
    %18 = tpu.assume_multiple %17, 16 : i32
    %19 = arith.index_cast %18 : i32 to index
    %c0_14 = arith.constant 0 : index
    %20 = vector.load %arg11[%19, %c0_14] : memref<16x128xf32, #tpu.memory_space<vmem>>, vector<16x128xf32>
    %21 = vector.shape_cast %20 : vector<16x128xf32> to vector<16x1x128xf32>
    %22 = vector.shape_cast %16 : vector<16x128xf32> to vector<1x16x128xf32>
    %23 = vector.broadcast %21 : vector<16x1x128xf32> to vector<16x16x128xf32>
    %24 = vector.broadcast %22 : vector<1x16x128xf32> to vector<16x16x128xf32>
    %25 = arith.addf %23, %24 : vector<16x16x128xf32>
    %cst_15 = arith.constant 0.000000e+00 : f32
    %26 = vector.broadcast %cst_15 : f32 to vector<16x16x128xf32>
    %27 = arith.maximumf %25, %26 : vector<16x16x128xf32>
    %c0_16 = arith.constant 0 : index
    %28 = arith.index_cast %18 : i32 to index
    %c0_17 = arith.constant 0 : index
    %c0_18 = arith.constant 0 : index
    %29 = vector.load %arg10[%c0_16, %28, %c0_17, %c0_18] : memref<1x16x16x128xf32, #tpu.memory_space<vmem>>, vector<1x16x16x128xf32>
    %30 = vector.shape_cast %29 : vector<1x16x16x128xf32> to vector<16x16x128xf32>
    %31 = vector.shape_cast %27 : vector<16x16x128xf32> to vector<1x16x16x128xf32>
    tpu.vector_store %arg10[%c0_16, %28, %c0_17, %c0_18], %31 {strides = array<i32>} : memref<1x16x16x128xf32, #tpu.memory_space<vmem>>, vector<1x16x16x128xf32>,
    %c1_i32 = arith.constant 1 : i32
    return
  }
  func.func @transform_0(%arg0: i32, %arg1: i32, %arg2: i32) -> (i32, i32, i32) {
    %c0_i32 = arith.constant 0 : i32
    %c0_i32_0 = arith.constant 0 : i32
    return %arg0, %arg1, %c0_i32 : i32, i32, i32
  }
  func.func @transform_1(%arg0: i32, %arg1: i32, %arg2: i32) -> (i32, i32, i32) {
    %c0_i32 = arith.constant 0 : i32
    %c0_i32_0 = arith.constant 0 : i32
    return %arg0, %arg2, %c0_i32 : i32, i32, i32
  }
  func.func @transform_2(%arg0: i32, %arg1: i32, %arg2: i32) -> (i32, i32) {
    %c0_i32 = arith.constant 0 : i32
    %c0_i32_0 = arith.constant 0 : i32
    %c0_i32_1 = arith.constant 0 : i32
    return %c0_i32, %c0_i32_0 : i32, i32
  }
  func.func @transform_3(%arg0: i32, %arg1: i32, %arg2: i32) -> (i32, i32) {
    %c0_i32 = arith.constant 0 : i32
    %c0_i32_0 = arith.constant 0 : i32
    %c0_i32_1 = arith.constant 0 : i32
    return %c0_i32, %c0_i32_0 : i32, i32
  }
  func.func @transform_4(%arg0: i32, %arg1: i32, %arg2: i32) -> (i32, i32) {
    %c0_i32 = arith.constant 0 : i32
    %c0_i32_0 = arith.constant 0 : i32
    %c0_i32_1 = arith.constant 0 : i32
    return %c0_i32, %c0_i32_0 : i32, i32
  }
  func.func @transform_5(%arg0: i32, %arg1: i32, %arg2: i32) -> (i32, i32) {
    %c0_i32 = arith.constant 0 : i32
    %c0_i32_0 = arith.constant 0 : i32
    %c0_i32_1 = arith.constant 0 : i32
    return %c0_i32, %c0_i32_0 : i32, i32
  }
  func.func @transform_6(%arg0: i32, %arg1: i32, %arg2: i32) -> (i32, i32) {
    %c0_i32 = arith.constant 0 : i32
    %c0_i32_0 = arith.constant 0 : i32
    %c0_i32_1 = arith.constant 0 : i32
    return %c0_i32, %c0_i32_0 : i32, i32
  }
  func.func @transform_7(%arg0: i32, %arg1: i32, %arg2: i32) -> (i32, i32, i32, i32) {
    %c0_i32 = arith.constant 0 : i32
    %c0_i32_0 = arith.constant 0 : i32
    return %arg0, %arg1, %arg2, %c0_i32 : i32, i32, i32, i32
  }
}

</mosaic_0001>

<bundles_post_ra>
// kernel: tpu_custom_call.1
= control target key start
LH: loop header
LB: loop body
LE: loop exit
PB: predicated region body
PF: predicated region fallthrough
CT: control target
= control target key end

     0   :  { %s1674_s0 = inlined_call_operand.hbm [shape: f32[2,16,32], index: 0, kind: input, shape index: {}]   ;;  %s1675_s1 = inlined_call_operand.hbm [shape: f32[2,16,32], index: 1, kind: input, shape index: {}]   ;;  %s1676_s2 = inlined_call_operand.hbm [shape: f32[32,64], index: 2, kind: input, shape index: {}]   ;;  %s1677_s3 = inlined_call_operand.vmem [shape: f32[1,64], index: 3, kind: input, shape index: {}]   ;;  %s1678_s4 = inlined_call_operand.hbm [shape: f32[64,128], index: 4, kind: input, shape index: {}]   ;;  %s1679_s5 = inlined_call_operand.hbm [shape: f32[64,128], index: 5, kind: input, shape index: {}]   ;;  %s1680_s6 = inlined_call_operand.vmem [shape: f32[1,128], index: 6, kind: input, shape index: {}]   ;;  %s1681_s7 = inlined_call_operand.hbm [shape: f32[2,16,16,128], index: 7, kind: output, shape index: {}]  }
   0x1   :  { %1689 = sst [smem:[#allocation22_spill]] %s1676_s2 }
   0x2   :  { %1690 = sst [smem:[#allocation23_spill]] %s1678_s4 }
   0x3   :  { %1691 = sst [smem:[#allocation24_spill]] %s1679_s5 }
   0x4   :  { %12 = vsyncpa [#allocation4], 0 }
   0x5   :  { %14 = vsyncpa [#allocation4 + $0x1], 0 }
   0x6   :  { %15 = vsyncpa [#allocation7], 0 }
   0x7   :  { %17 = vsyncpa [#allocation7 + $0x1], 0 }
   0x8   :  { %18 = vsyncpa [#allocation10], 0 }
   0x9   :  { %19 = vsyncpa [#allocation5], 0 }
   0xa   :  { %21 = vsyncpa [#allocation5 + $0x1], 0  ;;  %s1344_s24 = smov 0   ;;  %s1346_s25 = smov 0  }
   0xb   :  { %s1348_s26 = smov 0   ;;  %s1350_s27 = smov 0  }
   0xc   :  { %s1352_s28 = smov 0   ;;  %s1354_s29 = smov 0  }
   0xd LB: > { %1692 = sst [smem:[#allocation18_spill]] %s1291_s28  ;;  %s1375_s30 = sadd.s32 4294967295, %s1295_s29   ;;  %s1295_s29 = sphi %s1354_s29, %s27_s29   ;;  %s1291_s28 = sphi %s1352_s28, %s1710_s28   ;;  %s1287_s27 = sphi %s1350_s27, %s1709_s27   ;;  %s1283_s26 = sphi %s1348_s26, %s1713_s26   ;;  %s1279_s25 = sphi %s1346_s25, %s1712_s25   ;;  %s1275_s24 = sphi %s1344_s24, %s1711_s24  }
   0xe   : > { %s911_s8 = sadd.s32 4294967294, %s1295_s29   ;;  %p68_p0 = scmp.ne.s32.totalorder %s1279_s25, %s1275_s24 }
   0xf   : > { %p69_p1 = scmp.eq.s32.totalorder %s1375_s30, 0  ;;  %p229_p2 = scmp.eq.s32.totalorder %s1375_s30, 1 }
  0x10   : > { %p235_p3 = scmp.eq.s32.totalorder %s911_s8, 1  ;;  %p912_p5 = scmp.ge.s32.totalorder %s1295_s29, 1 }
  0x11   : > { %p1384_p4 = por %p69_p1, %p68_p0  ;;  %p242_p7 = scmp.lt.s32.totalorder %s1295_s29, 3 }
  0x12   : > { %p1389_p6 = por %p235_p3, %p68_p0  ;;  %s1696_s2 = sld [smem:[#allocation22_spill]] }
  0x13   : > { %p1397_p8 = pnand %p912_p5, %p242_p7  ;;  %s1297_s15 = smov [#allocation8]  }
  0x14   : > { %s1694_s10 = scalar_select %p1389_p6, 1, 0 }
  0x15   : > { %p964_p9 = pneg %p1397_p8  ;;  %s255_s16 = sshll.u32 %s1297_s15, 4  ;;  %s256_s16 = int_to_ptr.vmem [resolvable:$true] %s255_s16 }
  0x16   : > { %1695 = sst [smem:[#allocation19_spill]] %s1694_s10  ;;  %p916_p11 = scmp.ge.s32.totalorder %s1295_s29, 2 }
  0x17   : > { %p1405_p10 = pnand %p964_p9, %p69_p1  ;;  %s1699_s4 = sld [smem:[#allocation23_spill]] }
  0x18   : > { %s253_s13 = sshll.u32 %s1696_s2, 4  ;;  %s1682_s21 = smov 128   ;;  %s254_s13 = int_to_ptr.hbm [resolvable:$true] %s253_s13 }
  0x19   : > { %s1684_s22 = smov 8   ;;  %s1300_s23 = smov [#allocation9]  }
  0x1a   : > { %967 = dma.hbm_to_vmem [thread:$0]  (!%p1405_p10), %s254_s13, 512, %s256_s16, [#allocation7], %s1682_s21, %s1682_s21, %s1684_s22  }
  0x1b   : > { %s272_s8 = sshll.u32 %s1300_s23, 4  ;;  %s1700_s5 = sld [smem:[#allocation24_spill]]  ;;  %s273_s8 = int_to_ptr.vmem [resolvable:$true] %s272_s8 }
  0x1c   : > { %s1301_s18 = smov [#allocation11]   ;;  %s46_s13 = sadd.s32 1, %s1291_s28 }
  0x1d   : > { %s270_s20 = sshll.u32 %s1699_s4, 4  ;;  %s286_s19 = sshll.u32 %s1301_s18, 4  ;;  %s271_s20 = int_to_ptr.hbm [resolvable:$true] %s270_s20  ;;  %s287_s19 = int_to_ptr.vmem [resolvable:$true] %s286_s19 }
  0x1e   : > { %970 = dma.hbm_to_vmem [thread:$0]  (!%p1405_p10), %s271_s20, 1024, %s273_s8, [#allocation10], %s1682_s21, %s1682_s21, %s1684_s22  }
  0x1f   : > { %p48_p12 = scmp.ge.s32.totalorder %s46_s13, 2  ;;  %s55_s16 = sadd.s32 1, %s1283_s26 }
  0x20   : > { %p62_p13 = scmp.ne.s32.totalorder %s1283_s26, %s1279_s25  ;;  %p63_p0 = scmp.eq.s32.totalorder %s1295_s29, 0 }
  0x21   : > { %s284_s15 = sshll.u32 %s1700_s5, 4  ;;  %s1715_s13 = smov (%p48_p12, %s46_s13), 0  ;;  %s285_s15 = int_to_ptr.hbm [resolvable:$true] %s284_s15 }
  0x22   : > { %973 = dma.hbm_to_vmem [thread:$0]  (!%p1405_p10), %s285_s15, 1024, %s287_s19, [#allocation10], %s1682_s21, %s1682_s21, %s1684_s22  }
  0x23   : > { %1701 = sst [smem:[#allocation20_spill]] %s1715_s13  ;;  %p1438_p3 = por %p63_p0, %p62_p13 }
  0x24   : > { %p1444_p5 = por %p229_p2, %p62_p13  ;;  %s50_s23 = ssub.s32 %s1291_s28, %s1715_s13 }
  0x25   : > { %p988_p7 = scmp.lt.s32.totalorder %s1295_s29, 2  ;;  %p53_p9 = scmp.eq.s32.totalorder %s50_s23, 0 }
  0x26   : > { %s303_s8 = sand.u32 1, %s1283_s26   ;;  %s943_s15 = sshll.u32 %s1291_s28, 4 }
  0x27   : > { %s917_s11 = sshll.u32 %s303_s8, 4  ;;  %s314_s21 = scalar_lea.hbm %s1674_s0, %s943_s15 }
  0x28   : > { %s1453_s12 = scalar_select %p53_p9, %s1283_s26, %s55_s16  }
  0x29   : > { %s307_s22 = scalar_lea.vmem [#allocation3], %s917_s11  ;;  %s315_s4 = sshll.u32 %s314_s21, 4  ;;  %s316_s4 = int_to_ptr.hbm [resolvable:$true] %s315_s4 }
  0x2a   : > { %1704 = sst [smem:[#allocation21_spill]] %s1453_s12  ;;  %s317_s2 = sshll.u32 %s307_s22, 4  ;;  %s318_s2 = int_to_ptr.vmem [resolvable:$true] %s317_s2 }
  0x2b   : > { %p975_p2 = pnand %p988_p7, %p1438_p3  ;;  %s338_s23 = scalar_lea.hbm %s1675_s1, %s943_s15 }
  0x2c   : > { %s339_s10 = sshll.u32 %s338_s23, 4  ;;  %s304_s16 = scalar_lea.sflag [#allocation4], %s303_s8  ;;  %s340_s10 = int_to_ptr.hbm [resolvable:$true] %s339_s10 }
  0x2d   : > { %s1705_s12 = smov 8   ;;  %s1706_s28 = smov 128  }
  0x2e   : > { %977 = dma.hbm_to_vmem [thread:$0]  (!%p975_p2), %s316_s4, 256, %s318_s2, %s304_s16, %s1706_s28, %s1706_s28, %s1705_s12  }
  0x2f   : > { %s331_s18 = scalar_lea.vmem [#allocation6], %s917_s11  ;;  %s327_s22 = sand.u32 1, %s1295_s29  }
  0x30   : > { %s341_s19 = sshll.u32 %s331_s18, 4  ;;  %s328_s21 = scalar_lea.sflag [#allocation7], %s327_s22  ;;  %s342_s19 = int_to_ptr.vmem [resolvable:$true] %s341_s19 }
  0x31   : > { %980 = dma.hbm_to_vmem [thread:$0]  (!%p975_p2), %s340_s10, 256, %s342_s19, %s328_s21, %s1706_s28, %s1706_s28, %s1705_s12  }
  0x32   : > { %353 = sbr.rel (%p1397_p8) target bundleno = 380 (0x17c), region = 48  ;;  %s1474_s5 = sand.u32 (!%p1397_p8), 1, %s1279_s25  }
  0x33   : > { %s924_s2 = sshll.u32 (!%p1397_p8), %s1474_s5, 4  ;;  %s356_s4 = scalar_lea.sflag (!%p1397_p8), [#allocation4], %s1474_s5 }
  0x34   : > { %s1478_s13 = scalar_lea.vmem (!%p1397_p8), [#allocation3], %s924_s2 }
  0x37   : > { %1254 = dma.done.wait (%p1384_p4), %s356_s4, 256  }
  0x38   : > { %1256 = vsyncadd (%p1384_p4), %s356_s4, 4294967040  ;;  %s365_s28 = sand.u32 1, %s1375_s30   ;;  %s1485_s14 = scalar_lea.vmem [#allocation6], %s924_s2 }
  0x39   : > { %s366_s10 = scalar_lea.sflag [#allocation7], %s365_s28 }
  0x3a   : > { %1258 = dma.done.wait (%p1384_p4), %s366_s10, 256  }
  0x3b   : > { %1260 = vsyncadd (%p1384_p4), %s366_s10, 4294967040 }
  0x3c   : > { %1262 = dma.done.wait (%p69_p1), [#allocation7], 512  }
  0x3d   : > { %1264 = vsyncadd (%p69_p1), [#allocation7], 4294966784 }
  0x3e   : > { %1266 = dma.done.wait (%p69_p1), [#allocation10], 2048  }
  0x3f   : > { %1268 = vsyncadd (%p69_p1), [#allocation10], 4294965248  ;;  %v516_v0 = vld [vmem:[#allocation8 + $0x18] sm:$0xff]  ;;  %v515_v1 = vld [vmem:[#allocation8 + $0x10] sm:$0xff]  ;;  %vm439_vm0 = vcmask 261120   ;;  %vm479_vm1 = vcmask 523264  }
  0x40   : > { %540 = vmatpush.msra.mxu2 %v516_v0  ;;  %458 = vmatpush.msra.mxu0 %v516_v0  ;;  %v514_v2 = vld [vmem:[#allocation8 + $0x8] sm:$0xff]  ;;  %v478_v3 = vld [vmem:[#allocation9 + $0x38] sm:$0xff]  ;;  %v477_v4 = vld [vmem:[#allocation9 + $0x30] sm:$0xff]  ;;  %s929_s15 = sshll.u32 %s1474_s5, 8  ;;  %s945_s16 = sshll.u32 %s1287_s27, 8 }
  0x41   : > { %v560_v5 = vld [vmem:[#allocation11 + $0x38] sm:$0xff]  ;;  %v513_v6 = vld [vmem:[#allocation8] sm:$0xff]  ;;  %494 = vmatpush.msra.mxu1 %v478_v3  ;;  %v559_v8 = vld [vmem:[#allocation11 + $0x30] sm:$0xff]  ;;  %s1570_s23 = scalar_lea.vmem [#allocation12], %s929_s15  ;;  %s760_s27 = scalar_lea.hbm %s1681_s7, %s945_s16 }
  0x42   : > { %541 = vmatpush.msra.mxu2 %v515_v1  ;;  %459 = vmatpush.msra.mxu0 %v515_v1  ;;  %v511_v7 = vld [vmem:[%s1485_s14] sm:$0xff]  ;;  %v476_v10 = vld [vmem:[#allocation9 + $0x28] sm:$0xff]  ;;  %v474_v13 = vld [vmem:[#allocation9 + $0x18] sm:$0xff]  ;;  %s761_s22 = sshll.u32 %s1570_s23, 4  ;;  %s763_s21 = sshll.u32 %s760_s27, 4  ;;  %s762_s22 = int_to_ptr.vmem [resolvable:$true] %s761_s22  ;;  %s764_s21 = int_to_ptr.hbm [resolvable:$true] %s763_s21 }
  0x43   : > { %580 = vmatpush.msra.mxu3 %v560_v5  ;;  %v429_v9 = vld [vmem:[%s1478_s13] sm:$0xff]  ;;  %495 = vmatpush.msra.mxu1 %v477_v4  ;;  %v558_v11 = vld [vmem:[#allocation11 + $0x28] sm:$0xff]  ;;  %v556_v19 = vld [vmem:[#allocation11 + $0x18] sm:$0xff]  ;;  %s744_s2 = scalar_lea.sflag [#allocation5], %s1474_s5  ;;  %s1215_s4 = sshra.s32 %s764_s21, 4  ;;  %s1216_s4 = int_to_ptr.hbm [resolvable:$true] %s1215_s4 }
  0x44   : > { %542 = vmatpush.msra.mxu2 %v514_v2  ;;  %460 = vmatpush.msra.mxu0 %v514_v2  ;;  %v475_v12 = vld [vmem:[#allocation9 + $0x20] sm:$0xff]  ;;  %v512_v14 = vld [vmem:[%s1485_s14 + $0x8] sm:$0xff]  ;;  %v473_v16 = vld [vmem:[#allocation9 + $0x10] sm:$0xff]  ;;  %s1221_s14 = scalar_lea.hbm %s1681_s7, 512  ;;  %p1222_p10 = scmp.lt.s32.totalorder %s1216_s4, %s1681_s7 }
  0x45   : > { %581 = vmatpush.msra.mxu3 %v559_v8  ;;  %496 = vmatpush.msra.mxu1 %v476_v10  ;;  %v430_v15 = vld [vmem:[%s1478_s13 + $0x8] sm:$0xff]  ;;  %v557_v17 = vld [vmem:[#allocation11 + $0x20] sm:$0xff]  ;;  %v555_v21 = vld [vmem:[#allocation11 + $0x10] sm:$0xff]  ;;  %s1217_s13 = scalar_lea.hbm %s1216_s4, 256 }
  0x46   : > { %543 = vmatpush.msra.mxu2 %v513_v6  ;;  %461 = vmatpush.msra.mxu0 %v513_v6  ;;  %v472_v18 = vld [vmem:[#allocation9 + $0x8] sm:$0xff]  ;;  %v471_v20 = vld [vmem:[#allocation9] sm:$0xff]  ;;  %p1218_p1 = scmp.ne.s32.totalorder %s1216_s4, %s1217_s13  ;;  %p1223_p12 = scmp.lt.s32.totalorder %s1221_s14, %s1217_s13 }
  0x47   : > { %934 = vmatmul.msk.f32.vlgmr.msra.gmra.mxu2 %vm439_vm0, %v511_v7  ;;  %930 = vmatmul.msk.f32.vlgmr.msra.gmra.mxu0 %vm439_vm0, %v429_v9  ;;  %v554_v22 = vld [vmem:[#allocation11 + $0x8] sm:$0xff]  ;;  %v553_v23 = vld [vmem:[#allocation11] sm:$0xff] }
  0x48   : > { %582 = vmatpush.msra.mxu3 %v558_v11  ;;  %497 = vmatpush.msra.mxu1 %v475_v12  ;;  %v1048_v24 = vld [vmem:[%s1677_s3] ss:$0 sm:$0xff]  ;;  %p1219_p4 = pnand %p1218_p1, %p1444_p5  ;;  %p1224_p13 = por %p1223_p12, %p1222_p10 }
  0x49   : > { %v1049_v28 = vld [vmem:[%s1677_s3] ss:$0 sm:$0xff] }
  0x4a   : > { %498 = vmatpush.msra.mxu1 %v474_v13  ;;  %583 = vmatpush.msra.mxu3 %v557_v17  ;;  %v1050_v43 = vld [vmem:[%s1680_s6] ss:$0 sm:$0xff]  ;;  %p1220_p8 = pneg %p1219_p4 }
  0x4c   : > { %499 = vmatpush.msra.mxu1 %v473_v16  ;;  %584 = vmatpush.msra.mxu3 %v556_v19  ;;  %p1225_p0 = pnand %p1224_p13, %p1220_p8 }
  0x4e   : > { %500 = vmatpush.msra.mxu1 %v472_v18  ;;  %585 = vmatpush.msra.mxu3 %v555_v21 }
  0x4f   : > { %935 = vmatmul.msk.f32.gmra.mxu2 %vm439_vm0, %v512_v14  ;;  %931 = vmatmul.msk.f32.gmra.mxu0 %vm439_vm0, %v430_v15 }
  0x50   : > { %501 = vmatpush.msra.mxu1 %v471_v20  ;;  %586 = vmatpush.msra.mxu3 %v554_v22 }
  0x52   : > { %587 = vmatpush.msra.mxu3 %v553_v23 }
  0xc4   : > { %v463_v25 = vpop.f32.mrf.mxu0 }
  0xc5   : > { %v464_v26 = vadd.f32 %v1048_v24, %v463_v25 }
  0xc7   : > { %v469_v27 = vmax.f32 %v464_v26, 0.0 }
  0xc9   : > { %932 = vmatmul.msk.f32.vlgmr.msra.gmra.mxu1 %vm479_vm1, %v469_v27 }
  0xca   : > { %v545_v29 = vpop.f32.mrf.mxu2 }
  0xcb   : > { %v546_v30 = vadd.f32 %v1049_v28, %v545_v29 }
  0xcc   : > { %v466_v31 = vpop.f32.mrf.mxu0 }
  0xcd   : > { %v551_v32 = vmax.f32 %v546_v30, 0.0  ;;  %v467_v33 = vadd.f32 %v1048_v24, %v466_v31 }
  0xcf   : > { %v470_v34 = vmax.f32 %v467_v33, 0.0  ;;  %936 = vmatmul.msk.f32.vlgmr.msra.gmra.mxu3 %vm479_vm1, %v551_v32 }
  0xd1   : > { %933 = vmatmul.msk.f32.gmra.mxu1 %vm479_vm1, %v470_v34 }
  0xd2   : > { %v548_v35 = vpop.f32.mrf.mxu2 }
  0xd3   : > { %v549_v36 = vadd.f32 %v1049_v28, %v548_v35 }
  0xd5   : > { %v552_v37 = vmax.f32 %v549_v36, 0.0 }
  0xd7   : > { %937 = vmatmul.msk.f32.gmra.mxu3 %vm479_vm1, %v552_v37 }
 0x146   : > { %v1513_v38 = vpop.f32.mrf.mxu1 }
 0x147   : > { %v599_v39 = vrot.slane %v1513_v38, 1  ;;  %v600_v40 = vrot.slane %v1513_v38, 2  ;;  %v601_v41 = vrot.slane %v1513_v38, 3  ;;  %v602_v42 = vrot.slane %v1513_v38, 4 }
 0x148   : > { %v603_v44 = vrot.slane %v1513_v38, 5  ;;  %v604_v45 = vrot.slane %v1513_v38, 6  ;;  %v605_v49 = vrot.slane %v1513_v38, 7  ;;  %v613_v52 = vperm.slane %v1513_v38, 0 }
 0x149   : > { %v1524_v46 = vperm.slane %v599_v39, 0  ;;  %v1526_v47 = vperm.slane %v600_v40, 0  ;;  %v1531_v50 = vperm.slane %v601_v41, 0  ;;  %v1534_v53 = vperm.slane %v602_v42, 0 }
 0x14a   : > { %v1536_v55 = vperm.slane %v603_v44, 0  ;;  %v1540_v58 = vperm.slane %v604_v45, 0  ;;  %v1547_v62 = vperm.slane %v605_v49, 0 }
 0x14e   : > { %v1528_v48 = vpop.f32.mrf.mxu1 }
 0x14f   : > { %v606_v56 = vrot.slane %v1528_v48, 1  ;;  %v607_v57 = vrot.slane %v1528_v48, 2  ;;  %v608_v63 = vrot.slane %v1528_v48, 3  ;;  %v609_v1 = vrot.slane %v1528_v48, 4 }
 0x150   : > { %v610_v2 = vrot.slane %v1528_v48, 5  ;;  %v621_v3 = vperm.slane %v1528_v48, 0  ;;  %v611_v5 = vrot.slane %v1528_v48, 6  ;;  %v612_v13 = vrot.slane %v1528_v48, 7 }
 0x151   : > { %v1556_v6 = vperm.slane %v606_v56, 0  ;;  %v1558_v7 = vperm.slane %v607_v57, 0  ;;  %v1563_v14 = vperm.slane %v608_v63, 0  ;;  %v1566_v17 = vperm.slane %v609_v1, 0 }
 0x152   : > { %v589_v51 = vpop.f32.mrf.mxu3  ;;  %v1573_v20 = vperm.slane %v610_v2, 0  ;;  %v1577_v24 = vperm.slane %v611_v5, 0  ;;  %v1581_v27 = vperm.slane %v612_v13, 0 }
 0x153   : > { %v590_v54 = vadd.f32 %v1050_v43, %v589_v51 }
 0x155   : > { %v645_v59 = vadd.f32 %v613_v52, %v590_v54  ;;  %v647_v60 = vadd.f32 %v1524_v46, %v590_v54  ;;  %v649_v61 = vadd.f32 %v1526_v47, %v590_v54  ;;  %v651_v0 = vadd.f32 %v1531_v50, %v590_v54 }
 0x156   : > { %v653_v4 = vadd.f32 %v1534_v53, %v590_v54  ;;  %v655_v8 = vadd.f32 %v1536_v55, %v590_v54  ;;  %v657_v9 = vadd.f32 %v1540_v58, %v590_v54  ;;  %v659_v15 = vadd.f32 %v1547_v62, %v590_v54 }
 0x157   : > { %v677_v10 = vmax.f32 %v645_v59, 0.0  ;;  %v679_v11 = vmax.f32 %v647_v60, 0.0  ;;  %v681_v12 = vmax.f32 %v649_v61, 0.0  ;;  %v683_v16 = vmax.f32 %v651_v0, 0.0 }
 0x158   : > { %v661_v18 = vadd.f32 %v621_v3, %v590_v54  ;;  %v685_v19 = vmax.f32 %v653_v4, 0.0  ;;  %v663_v21 = vadd.f32 %v1556_v6, %v590_v54  ;;  %v687_v22 = vmax.f32 %v655_v8, 0.0 }
 0x159   : > { %711 = vst [vmem:[%s1570_s23] sm:$0xff] %v677_v10  ;;  %v665_v25 = vadd.f32 %v1558_v7, %v590_v54  ;;  %v689_v26 = vmax.f32 %v657_v9, 0.0  ;;  %v667_v28 = vadd.f32 %v1563_v14, %v590_v54  ;;  %v691_v29 = vmax.f32 %v659_v15, 0.0 }
 0x15a   : > { %713 = vst [vmem:[%s1570_s23 + $0x10] sm:$0xff] %v679_v11  ;;  %v592_v23 = vpop.f32.mrf.mxu3  ;;  %v669_v30 = vadd.f32 %v1566_v17, %v590_v54  ;;  %v693_v31 = vmax.f32 %v661_v18, 0.0  ;;  %v671_v33 = vadd.f32 %v1573_v20, %v590_v54  ;;  %v695_v34 = vmax.f32 %v663_v21, 0.0 }
 0x15b   : > { %715 = vst [vmem:[%s1570_s23 + $0x20] sm:$0xff] %v681_v12  ;;  %v593_v32 = vadd.f32 %v1050_v43, %v592_v23  ;;  %v673_v35 = vadd.f32 %v1577_v24, %v590_v54  ;;  %v697_v36 = vmax.f32 %v665_v25, 0.0  ;;  %v675_v37 = vadd.f32 %v1581_v27, %v590_v54 }
 0x15c   : > { %717 = vst [vmem:[%s1570_s23 + $0x30] sm:$0xff] %v683_v16  ;;  %v699_v39 = vmax.f32 %v667_v28, 0.0  ;;  %v701_v40 = vmax.f32 %v669_v30, 0.0  ;;  %v703_v42 = vmax.f32 %v671_v33, 0.0 }
 0x15d   : > { %719 = vst [vmem:[%s1570_s23 + $0x40] sm:$0xff] %v685_v19  ;;  %v646_v41 = vadd.f32 %v613_v52, %v593_v32  ;;  %v648_v43 = vadd.f32 %v1524_v46, %v593_v32  ;;  %v705_v44 = vmax.f32 %v673_v35, 0.0  ;;  %v650_v45 = vadd.f32 %v1526_v47, %v593_v32 }
 0x15e   : > { %721 = vst [vmem:[%s1570_s23 + $0x50] sm:$0xff] %v687_v22  ;;  %v707_v49 = vmax.f32 %v675_v37, 0.0  ;;  %v652_v51 = vadd.f32 %v1531_v50, %v593_v32  ;;  %v654_v54 = vadd.f32 %v1534_v53, %v593_v32  ;;  %v656_v52 = vadd.f32 %v1536_v55, %v593_v32 }
 0x15f   : > { %723 = vst [vmem:[%s1570_s23 + $0x60] sm:$0xff] %v689_v26  ;;  %v678_v38 = vmax.f32 %v646_v41, 0.0  ;;  %v680_v46 = vmax.f32 %v648_v43, 0.0  ;;  %v658_v56 = vadd.f32 %v1540_v58, %v593_v32  ;;  %v682_v47 = vmax.f32 %v650_v45, 0.0 }
 0x160   : > { %725 = vst [vmem:[%s1570_s23 + $0x70] sm:$0xff] %v691_v29  ;;  %v660_v57 = vadd.f32 %v1547_v62, %v593_v32  ;;  %v684_v50 = vmax.f32 %v652_v51, 0.0  ;;  %v662_v53 = vadd.f32 %v621_v3, %v593_v32  ;;  %v686_v59 = vmax.f32 %v654_v54, 0.0 }
 0x161   : > { %727 = vst [vmem:[%s1570_s23 + $0x80] sm:$0xff] %v693_v31  ;;  %v664_v55 = vadd.f32 %v1556_v6, %v593_v32  ;;  %v688_v60 = vmax.f32 %v656_v52, 0.0  ;;  %v666_v58 = vadd.f32 %v1558_v7, %v593_v32  ;;  %v690_v61 = vmax.f32 %v658_v56, 0.0 }
 0x162   : > { %729 = vst [vmem:[%s1570_s23 + $0x90] sm:$0xff] %v695_v34  ;;  %v668_v63 = vadd.f32 %v1563_v14, %v593_v32  ;;  %v692_v62 = vmax.f32 %v660_v57, 0.0  ;;  %v670_v48 = vadd.f32 %v1566_v17, %v593_v32  ;;  %v694_v0 = vmax.f32 %v662_v53, 0.0 }
 0x163   : > { %731 = vst [vmem:[%s1570_s23 + $0xa0] sm:$0xff] %v697_v36  ;;  %v672_v1 = vadd.f32 %v1573_v20, %v593_v32  ;;  %v696_v2 = vmax.f32 %v664_v55, 0.0  ;;  %v674_v3 = vadd.f32 %v1577_v24, %v593_v32  ;;  %v698_v4 = vmax.f32 %v666_v58, 0.0 }
 0x164   : > { %733 = vst [vmem:[%s1570_s23 + $0xb0] sm:$0xff] %v699_v39  ;;  %v676_v5 = vadd.f32 %v1581_v27, %v593_v32  ;;  %v700_v6 = vmax.f32 %v668_v63, 0.0  ;;  %v702_v7 = vmax.f32 %v670_v48, 0.0 }
 0x165   : > { %735 = vst [vmem:[%s1570_s23 + $0xc0] sm:$0xff] %v701_v40  ;;  %v704_v8 = vmax.f32 %v672_v1, 0.0  ;;  %v706_v9 = vmax.f32 %v674_v3, 0.0 }
 0x166   : > { %737 = vst [vmem:[%s1570_s23 + $0xd0] sm:$0xff] %v703_v42  ;;  %v708_v10 = vmax.f32 %v676_v5, 0.0 }
 0x167   : > { %739 = vst [vmem:[%s1570_s23 + $0xe0] sm:$0xff] %v705_v44 }
 0x168   : > { %741 = vst [vmem:[%s1570_s23 + $0xf0] sm:$0xff] %v707_v49 }
 0x169   : > { %712 = vst [vmem:[%s1570_s23 + $0x8] sm:$0xff] %v678_v38 }
 0x16a   : > { %714 = vst [vmem:[%s1570_s23 + $0x18] sm:$0xff] %v680_v46 }
 0x16b   : > { %716 = vst [vmem:[%s1570_s23 + $0x28] sm:$0xff] %v682_v47 }
 0x16c   : > { %718 = vst [vmem:[%s1570_s23 + $0x38] sm:$0xff] %v684_v50 }
 0x16d   : > { %720 = vst [vmem:[%s1570_s23 + $0x48] sm:$0xff] %v686_v59 }
 0x16e   : > { %722 = vst [vmem:[%s1570_s23 + $0x58] sm:$0xff] %v688_v60 }
 0x16f   : > { %724 = vst [vmem:[%s1570_s23 + $0x68] sm:$0xff] %v690_v61 }
 0x170   : > { %726 = vst [vmem:[%s1570_s23 + $0x78] sm:$0xff] %v692_v62 }
 0x171   : > { %728 = vst [vmem:[%s1570_s23 + $0x88] sm:$0xff] %v694_v0 }
 0x172   : > { %730 = vst [vmem:[%s1570_s23 + $0x98] sm:$0xff] %v696_v2 }
 0x173   : > { %732 = vst [vmem:[%s1570_s23 + $0xa8] sm:$0xff] %v698_v4 }
 0x174   : > { %734 = vst [vmem:[%s1570_s23 + $0xb8] sm:$0xff] %v700_v6 }
 0x175   : > { %736 = vst [vmem:[%s1570_s23 + $0xc8] sm:$0xff] %v702_v7 }
 0x176   : > { %738 = vst [vmem:[%s1570_s23 + $0xd8] sm:$0xff] %v704_v8 }
 0x177   : > { %740 = vst [vmem:[%s1570_s23 + $0xe8] sm:$0xff] %v706_v9 }
 0x178   : > { %742 = vst [vmem:[%s1570_s23 + $0xf8] sm:$0xff] %v708_v10 }
 0x179   : > { %1228 = shalt.err (!%p1225_p0)
}
 0x17a   : > { %s1302_s5 = smov 128   ;;  %s1303_s20 = smov 8  }
 0x17b   : > { %962 = dma.vmem_to_hbm [thread:$0]  (%p1444_p5), %s762_s22, 4096, %s764_s21, %s744_s2, %s1302_s5, %s1302_s5, %s1303_s20  }
 0x17c PF: > { %s778_s11 = sand.u32 1, %s1275_s24   ;;  %p982_p3 = pnand %p916_p11, %p1389_p6 }
 0x17d   : > { %s779_s12 = scalar_lea.sflag [#allocation5], %s778_s11 }
 0x17e   : > { %p983_p7 = pneg %p982_p3 }
 0x180   : > { %1270 = dma.done.wait (%p983_p7), %s779_s12, 4096  }
 0x181   : > { %1272 = vsyncadd (%p983_p7), %s779_s12, 4294963200  ;;  %s27_s29 = sadd.s32 1, %s1295_s29   ;;  %s1708_s15 = sld [smem:[#allocation21_spill]] }
 0x182   : > { %p24_p9 = scmp.ge.s32.totalorder %s27_s29, 4   ;;  %s1709_s27 = sld [smem:[#allocation18_spill]] }
 0x183   : > { %s1710_s28 = sld [smem:[#allocation20_spill]]  ;;  %s1711_s24 = smov %s1279_s25 }
 0x184   : > { %s1712_s25 = smov %s1283_s26  ;;  %26 = sbr.rel (!%p24_p9) target bundleno = 13 (0xd), region = 123 }
 0x187   : > { %s1713_s26 = smov %s1708_s15 }
 0x189   :  { %785 = vsyncpa [#allocation4], 1 }
 0x18a   :  { %787 = vsyncpa [#allocation4 + $0x1], 1 }
 0x18b   :  { %788 = vsyncpa [#allocation7], 1 }
 0x18c   :  { %790 = vsyncpa [#allocation7 + $0x1], 1 }
 0x18d   :  { %791 = vsyncpa [#allocation10], 1 }
 0x18e   :  { %792 = vsyncpa [#allocation5], 1 }
 0x18f   :  { %794 = vsyncpa [#allocation5 + $0x1], 1 }

</bundles_post_ra>
